<compile_context>
chip_gen: v5e
topology: v5e:2x2
jax: 0.10.0
libtpu: 0.0.40
codegen_flags: <defaults>
</compile_context>

<pallas_src>
import functools
import warnings

import numpy as np
import jax
import jax.numpy as jnp
from jax import lax
from jax.experimental import pallas as pl
from jax.experimental.pallas import tpu as pltpu


# ---------------------------------------------------------------------------
# Roll helper.  Probe pltpu.roll's shift convention once per sublane extent
# with a tiny kernel; fall back (loudly) to jnp.roll if it does not lower.
# ---------------------------------------------------------------------------
_ROLL_MODE_CACHE = {}


def _roll_probe_kernel(x_ref, o_ref):
    o_ref[...] = pltpu.roll(x_ref[...], 1, 0)


def _get_roll_mode(nrows):
    mode = _ROLL_MODE_CACHE.get(nrows)
    if mode is not None:
        return mode
    x = np.tile(np.arange(nrows, dtype=np.float32)[:, None], (1, 128))
    try:
        out = pl.pallas_call(
            _roll_probe_kernel,
            out_shape=jax.ShapeDtypeStruct((nrows, 128), jnp.float32),
        )(jnp.asarray(x))
        out = np.asarray(jax.block_until_ready(out))
        if np.array_equal(out, np.roll(x, 1, axis=0)):
            mode = "pltpu"            # pltpu.roll == np.roll
        elif np.array_equal(out, np.roll(x, -1, axis=0)):
            mode = "pltpu_flipped"    # opposite shift sign
        else:
            mode = "jnp"
    except Exception:
        mode = "jnp"                  # sublane roll unsupported at this extent
    if mode == "jnp":
        warnings.warn(
            "pltpu.roll unavailable or had unexpected semantics for %d sublanes;"
            " falling back to jnp.roll inside the sort network (slow"
            " slice+concat relayout path)." % nrows,
            RuntimeWarning, stacklevel=2)
    _ROLL_MODE_CACHE[nrows] = mode
    return mode


def _roll_rows(x, shift, mode):
    """out[i] = x[(i + shift) % N] along axis 0 (shift may be negative)."""
    n = x.shape[0]
    s = shift % n
    if s == 0:
        return x
    if mode == "pltpu":
        return pltpu.roll(x, (n - s) % n, 0)
    if mode == "pltpu_flipped":
        return pltpu.roll(x, s, 0)
    return jnp.roll(x, -s, axis=0)


# ---------------------------------------------------------------------------
# Bitonic sort of each `half`-row group of a (two_b, width) tile, along the
# batch (sublane) axis.  Stage masks are built once (hoisted) and reused by
# every pair in the block.
# ---------------------------------------------------------------------------
def _build_sort_stages(two_b, half, width):
    """Returns [(j, is_lower, keep_min), ...] for an ascending bitonic sort of
    each `half`-row group of a (two_b, width) tile.  `half` must be a power of
    two; masking the row index with (half - 1) keeps the two halves
    independent (no lane-concat needed)."""
    if half <= 1:
        return []
    rowm = lax.broadcasted_iota(jnp.int32, (two_b, width), 0) & (half - 1)
    stages = []
    k = 2
    while k <= half:
        j = k // 2
        while j >= 1:
            is_lower = (rowm & j) == 0           # low index of its pair
            is_asc = (rowm & k) == 0             # block sort direction
            keep_min = is_lower == is_asc
            stages.append((j, is_lower, keep_min))
            j //= 2
        k *= 2
    return stages


def _bitonic_sort_halves(x, stages, roll_mode):
    """Apply precomputed compare-exchange stages to x (two_b, width), f32."""
    for j, is_lower, keep_min in stages:
        up = _roll_rows(x, j, roll_mode)          # x[(i + j) % two_b]
        dn = _roll_rows(x, -j, roll_mode)         # x[(i - j) % two_b]
        partner = jnp.where(is_lower, up, dn)     # x[i ^ j]
        x = jnp.where(keep_min,
                      jnp.minimum(x, partner),
                      jnp.maximum(x, partner))
    return x


# ---------------------------------------------------------------------------
# Kernel: one block of agent pairs per grid step.
# ---------------------------------------------------------------------------
def _swd_block_kernel(ii_ref, jj_ref, agents_ref, proj_ref, out_ref,
                      lhs_ref, pxy_ref, *, pairs_per_block, roll_mode):
    """
    ii_ref, jj_ref : (n_pairs_padded,) int32 in SMEM (scalar prefetch)
    agents_ref     : (num_agents, B, D) VMEM, resident across all steps
    proj_ref       : (ppb, D, P) VMEM, this block's per-pair projections
    out_ref        : (1, ppb, P) VMEM, per-projection squared-W2 partial sums
    lhs_ref        : (ppb, 2B, D) VMEM scratch, MXU operand dtype
    pxy_ref        : (ppb, 2B, P) f32 VMEM scratch (projected X stacked on Y)
    """
    blk = pl.program_id(0)
    _, B, _ = agents_ref.shape
    _, _, P = proj_ref.shape
    inv_b = 1.0 / B

    # Gather this block's pairs into one stacked MXU LHS: rows [0, B) = X,
    # rows [B, 2B) = Y.  Agent indices are dynamic scalars read from SMEM.
    for t in range(pairs_per_block):
        pair = blk * pairs_per_block + t
        lhs_ref[t, pl.ds(0, B), :] = agents_ref[ii_ref[pair]]
        lhs_ref[t, pl.ds(B, B), :] = agents_ref[jj_ref[pair]]

    # One batched MXU contraction for the whole block of pairs (f32 accum).
    pxy_ref[...] = jnp.einsum(
        "tbd,tdp->tbp", lhs_ref[...], proj_ref[...],
        preferred_element_type=jnp.float32)

    # Hoisted iota + per-stage masks, shared by every pair in this block.
    stages = _build_sort_stages(2 * B, B, P)

    # Per pair: sort X rows and Y rows independently along sublanes (no
    # lane-concat), then write the per-projection squared gap directly.
    for t in range(pairs_per_block):
        s = _bitonic_sort_halves(pxy_ref[t], stages, roll_mode)   # (2B, P)
        d = s[:B, :] - s[B:, :]
        out_ref[0, pl.ds(t, 1), :] = (
            jnp.sum(d * d, axis=0, keepdims=True) * inv_b)


# ---------------------------------------------------------------------------
# Host-side wrapper.
# ---------------------------------------------------------------------------
def make_projections(key, n_pairs, dim_features, num_projections):
    """Fresh per-pair random projections with L2-normalized columns
    (matches torch.randn + F.normalize(p=2, dim=0))."""
    projs = []
    for idx in range(n_pairs):
        k = jax.random.fold_in(key, idx)
        p = jax.random.normal(k, (dim_features, num_projections), jnp.float32)
        p = p / jnp.maximum(jnp.linalg.norm(p, axis=0, keepdims=True), 1e-12)
        projs.append(p)
    return jnp.stack(projs)                                  # (n_pairs, D, P)


def pairwise_sliced_w2_pallas(agent_logits, num_projections=128, key=None,
                              projections=None, mxu_dtype=jnp.bfloat16,
                              max_pairs_per_block=4):
    """Average pairwise squared sliced-W2 distance among agent logits.

    agent_logits: list of (B, D) arrays (B must be a power of two).
    """
    num_agents = len(agent_logits)
    if num_agents < 2:
        return jnp.float32(0.0)
    if key is None:
        key = jax.random.PRNGKey(0)

    B, D = agent_logits[0].shape
    assert B > 0 and (B & (B - 1)) == 0, "batch must be a power of two"
    # TODO(synk): pad the batch axis (with sentinel masking) to support
    # non-power-of-two batch sizes.

    pairs = [(i, j) for i in range(num_agents) for j in range(i + 1, num_agents)]
    n_pairs = len(pairs)
    if projections is None:
        projections = make_projections(key, n_pairs, D, num_projections)
    P = projections.shape[-1]

    # Block the pair axis: big enough to amortize per-step pipeline overhead,
    # small enough to (a) keep the double-buffered proj block inside v7x's
    # 64 MiB VMEM and (b) leave >= 2 grid steps so the "parallel" pair-block
    # axis can be sharded across the two v7x TensorCores.
    ppb = max(1, min(max_pairs_per_block, pl.cdiv(n_pairs, 2)))
    num_blocks = pl.cdiv(n_pairs, ppb)
    n_pad = num_blocks * ppb

    # Padded pairs point agent 0 at itself and use a zero projection (exactly
    # zero distance); they are sliced away before the final mean anyway.
    ii = jnp.asarray([p[0] for p in pairs] + [0] * (n_pad - n_pairs), jnp.int32)
    jj = jnp.asarray([p[1] for p in pairs] + [0] * (n_pad - n_pairs), jnp.int32)

    agents = jnp.stack([a.astype(jnp.float32) for a in agent_logits])  # (A,B,D)
    proj = projections.astype(jnp.float32)
    if n_pad > n_pairs:
        proj = jnp.concatenate(
            [proj, jnp.zeros((n_pad - n_pairs, D, P), proj.dtype)], axis=0)

    # bf16 MXU operands by default (halves HBM traffic + VMEM); sort and
    # accumulation stay f32 via preferred_element_type and f32 scratch/out.
    agents_in = agents.astype(mxu_dtype)
    proj_in = proj.astype(mxu_dtype)
    A = num_agents
    item = jnp.dtype(mxu_dtype).itemsize

    # Explicit VMEM budget (pipeline double-buffers the inputs) with headroom,
    # clamped so it is also valid on v7x's 64 MiB per-core VMEM.
    vmem_need = (2 * A * B * D * item            # agents block (resident)
                 + 2 * ppb * D * P * item        # proj block
                 + 2 * ppb * P * 4               # out block
                 + ppb * 2 * B * D * item        # lhs scratch
                 + ppb * 2 * B * P * 4)          # pxy scratch
    vmem_limit = int(min(max(2 * vmem_need, 32 * 1024 * 1024),
                         64 * 1024 * 1024))

    roll_mode = _get_roll_mode(2 * B)
    kernel = functools.partial(_swd_block_kernel,
                               pairs_per_block=ppb, roll_mode=roll_mode)

    per_proj = pl.pallas_call(
        kernel,
        out_shape=jax.ShapeDtypeStruct((num_blocks, ppb, P), jnp.float32),
        grid_spec=pltpu.PrefetchScalarGridSpec(
            num_scalar_prefetch=2,
            grid=(num_blocks,),
            in_specs=[
                # All agent logits, DMA'd once and resident across all steps.
                # TODO(synk): pipeline_mode=pl.Buffered(1) would single-buffer
                # this grid-invariant block on VMEM-tight v7x.
                pl.BlockSpec((A, B, D), lambda b, ii, jj: (0, 0, 0)),
                # Per-pair projections for this block of pairs.
                pl.BlockSpec((ppb, D, P), lambda b, ii, jj: (b, 0, 0)),
            ],
            out_specs=pl.BlockSpec((1, ppb, P), lambda b, ii, jj: (b, 0, 0)),
            scratch_shapes=[
                pltpu.VMEM((ppb, 2 * B, D), mxu_dtype),
                pltpu.VMEM((ppb, 2 * B, P), jnp.float32),
            ],
        ),
        compiler_params=pltpu.CompilerParams(
            dimension_semantics=("parallel",),
            vmem_limit_bytes=vmem_limit,
        ),
    )(ii, jj, agents_in, proj_in)

    per_proj = per_proj.reshape(n_pad, P)[:n_pairs]        # lane-dense rows
    # mean over projections per pair, then mean over pairs == one global mean.
    return jnp.mean(per_proj)


class SlicedWassersteinLogitsRegularizer:
    """Sliced Wasserstein regularizer applied on agent output logits."""

    def __init__(self, num_projections: int = 128):
        self.num_projections = num_projections

    def __call__(self, agent_logits, key=None):
        return pairwise_sliced_w2_pallas(
            agent_logits, num_projections=self.num_projections, key=key)


def _reference(agent_logits, projections, pairs):
    """Pure-JAX reference using the same projections (jnp.sort based)."""
    vals = []
    for idx, (i, j) in enumerate(pairs):
        Xp = agent_logits[i].astype(jnp.float32) @ projections[idx]
        Yp = agent_logits[j].astype(jnp.float32) @ projections[idx]
        Xs = jnp.sort(Xp, axis=0)
        Ys = jnp.sort(Yp, axis=0)
        B = Xp.shape[0]
        vals.append(jnp.mean(jnp.sum((Xs - Ys) ** 2, axis=0) / B))
    return jnp.mean(jnp.stack(vals))


if __name__ == "__main__":
    key = jax.random.PRNGKey(0)
    num_agents = 3
    B, D = 8, 32                 # batch (power of 2), logits feature dim
    num_projections = 128

    agent_keys = jax.random.split(key, num_agents)
    agent_logits = [
        jax.random.normal(agent_keys[a], (B, D), dtype=jnp.float32)
        for a in range(num_agents)
    ]

    pairs = [(i, j) for i in range(num_agents) for j in range(i + 1, num_agents)]
    proj_key = jax.random.PRNGKey(42)
    projections = make_projections(proj_key, len(pairs), D, num_projections)

    # Default fast path: bf16 MXU operands, f32 sort/accumulation.
    result_bf16 = pairwise_sliced_w2_pallas(
        agent_logits, num_projections=num_projections, projections=projections)
    result_bf16 = jax.block_until_ready(result_bf16)

    # f32 MXU operands for a tight numerical check against the reference.
    result_f32 = pairwise_sliced_w2_pallas(
        agent_logits, num_projections=num_projections, projections=projections,
        mxu_dtype=jnp.float32)
    result_f32 = jax.block_until_ready(result_f32)

    ref = jax.block_until_ready(_reference(agent_logits, projections, pairs))
    assert jnp.allclose(result_f32, ref, rtol=1e-3, atol=1e-5), (result_f32, ref)
    assert jnp.allclose(result_bf16, ref, rtol=2e-2, atol=1e-3), (result_bf16, ref)

    print("KERNEL_OK")
</pallas_src>

<mosaic_0001>
module attributes {stable_mosaic.version = 11 : i64} {
  func.func @_roll_probe_kernel(%arg0: memref<16x128xf32, #tpu.memory_space<vmem>>, %arg1: memref<16x128xf32, #tpu.memory_space<vmem>>) attributes {dimension_semantics = [], scalar_prefetch = 0 : i64, scratch_operands = 0 : i64, tpu.core_type = #tpu.core_type<tc>} {
    %c0 = arith.constant 0 : index
    %c0_0 = arith.constant 0 : index
    %0 = vector.load %arg0[%c0, %c0_0] : memref<16x128xf32, #tpu.memory_space<vmem>>, vector<16x128xf32>
    %c1_i32 = arith.constant 1 : i32
    %1 = tpu.dynamic_rotate %0 by %c1_i32 dim 0 : vector<16x128xf32>, i32 -> vector<16x128xf32>
    %c0_1 = arith.constant 0 : index
    %c0_2 = arith.constant 0 : index
    %2 = vector.load %arg1[%c0_1, %c0_2] : memref<16x128xf32, #tpu.memory_space<vmem>>, vector<16x128xf32>
    tpu.vector_store %arg1[%c0_1, %c0_2], %1 {strides = array<i32>} : memref<16x128xf32, #tpu.memory_space<vmem>>, vector<16x128xf32>,
    return
  }
}

module attributes {stable_mosaic.version = 11 : i64} {
  func.func @_swd_block_kernel(%arg0: i32, %arg1: memref<4xi32, #tpu.memory_space<smem>>, %arg2: memref<4xi32, #tpu.memory_space<smem>>, %arg3: memref<3x8x32xbf16, #tpu.memory_space<vmem>>, %arg4: memref<2x32x128xbf16, #tpu.memory_space<vmem>>, %arg5: memref<1x2x128xf32, #tpu.memory_space<vmem>>, %arg6: memref<2x16x32xbf16, #tpu.memory_space<vmem>>, %arg7: memref<2x16x128xf32, #tpu.memory_space<vmem>>) attributes {dimension_semantics = [#tpu.dimension_semantics<parallel>], iteration_bounds = array<i64: 2>, scalar_prefetch = 2 : i64, scratch_operands = 2 : i64, tpu.core_type = #tpu.core_type<tc>, window_params = [{pipeline_mode = #tpu.pipeline_mode<synchronous>, transform_indices = @transform_0, window_bounds = array<i64: 3, 8, 32>}, {transform_indices = @transform_1, window_bounds = array<i64: 2, 32, 128>}, {transform_indices = @transform_2, window_bounds = array<i64: 1, 2, 128>}]} {
    %c2_i32 = arith.constant 2 : i32
    %0 = arith.muli %arg0, %c2_i32 : i32
    %c0_i32 = arith.constant 0 : i32
    %1 = arith.addi %0, %c0_i32 : i32
    %2 = arith.index_cast %1 : i32 to index
    %3 = memref.load %arg1[%2] : memref<4xi32, #tpu.memory_space<smem>>
    %4 = arith.index_cast %3 : i32 to index
    %c0 = arith.constant 0 : index
    %c0_0 = arith.constant 0 : index
    %5 = vector.load %arg3[%4, %c0, %c0_0] : memref<3x8x32xbf16, #tpu.memory_space<vmem>>, vector<1x8x32xbf16>
    %6 = vector.shape_cast %5 : vector<1x8x32xbf16> to vector<8x32xbf16>
    %c0_1 = arith.constant 0 : index
    %c0_2 = arith.constant 0 : index
    %c0_3 = arith.constant 0 : index
    %7 = vector.load %arg6[%c0_1, %c0_2, %c0_3] : memref<2x16x32xbf16, #tpu.memory_space<vmem>>, vector<1x8x32xbf16>
    %8 = vector.shape_cast %7 : vector<1x8x32xbf16> to vector<8x32xbf16>
    %9 = vector.shape_cast %6 : vector<8x32xbf16> to vector<1x8x32xbf16>
    tpu.vector_store %arg6[%c0_1, %c0_2, %c0_3], %9 {strides = array<i32>} : memref<2x16x32xbf16, #tpu.memory_space<vmem>>, vector<1x8x32xbf16>,
    %10 = arith.index_cast %1 : i32 to index
    %11 = memref.load %arg2[%10] : memref<4xi32, #tpu.memory_space<smem>>
    %12 = arith.index_cast %11 : i32 to index
    %c0_4 = arith.constant 0 : index
    %c0_5 = arith.constant 0 : index
    %13 = vector.load %arg3[%12, %c0_4, %c0_5] : memref<3x8x32xbf16, #tpu.memory_space<vmem>>, vector<1x8x32xbf16>
    %14 = vector.shape_cast %13 : vector<1x8x32xbf16> to vector<8x32xbf16>
    %c0_6 = arith.constant 0 : index
    %c8 = arith.constant 8 : index
    %c0_7 = arith.constant 0 : index
    %15 = vector.load %arg6[%c0_6, %c8, %c0_7] : memref<2x16x32xbf16, #tpu.memory_space<vmem>>, vector<1x8x32xbf16>
    %16 = vector.shape_cast %15 : vector<1x8x32xbf16> to vector<8x32xbf16>
    %17 = vector.shape_cast %14 : vector<8x32xbf16> to vector<1x8x32xbf16>
    tpu.vector_store %arg6[%c0_6, %c8, %c0_7], %17 {strides = array<i32>} : memref<2x16x32xbf16, #tpu.memory_space<vmem>>, vector<1x8x32xbf16>,
    %c2_i32_8 = arith.constant 2 : i32
    %18 = arith.muli %arg0, %c2_i32_8 : i32
    %c1_i32 = arith.constant 1 : i32
    %19 = arith.addi %18, %c1_i32 : i32
    %20 = arith.index_cast %19 : i32 to index
    %21 = memref.load %arg1[%20] : memref<4xi32, #tpu.memory_space<smem>>
    %22 = arith.index_cast %21 : i32 to index
    %c0_9 = arith.constant 0 : index
    %c0_10 = arith.constant 0 : index
    %23 = vector.load %arg3[%22, %c0_9, %c0_10] : memref<3x8x32xbf16, #tpu.memory_space<vmem>>, vector<1x8x32xbf16>
    %24 = vector.shape_cast %23 : vector<1x8x32xbf16> to vector<8x32xbf16>
    %c1 = arith.constant 1 : index
    %c0_11 = arith.constant 0 : index
    %c0_12 = arith.constant 0 : index
    %25 = vector.load %arg6[%c1, %c0_11, %c0_12] : memref<2x16x32xbf16, #tpu.memory_space<vmem>>, vector<1x8x32xbf16>
    %26 = vector.shape_cast %25 : vector<1x8x32xbf16> to vector<8x32xbf16>
    %27 = vector.shape_cast %24 : vector<8x32xbf16> to vector<1x8x32xbf16>
    tpu.vector_store %arg6[%c1, %c0_11, %c0_12], %27 {strides = array<i32>} : memref<2x16x32xbf16, #tpu.memory_space<vmem>>, vector<1x8x32xbf16>,
    %28 = arith.index_cast %19 : i32 to index
    %29 = memref.load %arg2[%28] : memref<4xi32, #tpu.memory_space<smem>>
    %30 = arith.index_cast %29 : i32 to index
    %c0_13 = arith.constant 0 : index
    %c0_14 = arith.constant 0 : index
    %31 = vector.load %arg3[%30, %c0_13, %c0_14] : memref<3x8x32xbf16, #tpu.memory_space<vmem>>, vector<1x8x32xbf16>
    %32 = vector.shape_cast %31 : vector<1x8x32xbf16> to vector<8x32xbf16>
    %c1_15 = arith.constant 1 : index
    %c8_16 = arith.constant 8 : index
    %c0_17 = arith.constant 0 : index
    %33 = vector.load %arg6[%c1_15, %c8_16, %c0_17] : memref<2x16x32xbf16, #tpu.memory_space<vmem>>, vector<1x8x32xbf16>
    %34 = vector.shape_cast %33 : vector<1x8x32xbf16> to vector<8x32xbf16>
    %35 = vector.shape_cast %32 : vector<8x32xbf16> to vector<1x8x32xbf16>
    tpu.vector_store %arg6[%c1_15, %c8_16, %c0_17], %35 {strides = array<i32>} : memref<2x16x32xbf16, #tpu.memory_space<vmem>>, vector<1x8x32xbf16>,
    %c0_18 = arith.constant 0 : index
    %c0_19 = arith.constant 0 : index
    %c0_20 = arith.constant 0 : index
    %36 = vector.load %arg6[%c0_18, %c0_19, %c0_20] : memref<2x16x32xbf16, #tpu.memory_space<vmem>>, vector<2x16x32xbf16>
    %c0_21 = arith.constant 0 : index
    %c0_22 = arith.constant 0 : index
    %c0_23 = arith.constant 0 : index
    %37 = vector.load %arg4[%c0_21, %c0_22, %c0_23] : memref<2x32x128xbf16, #tpu.memory_space<vmem>>, vector<2x32x128xbf16>
    "tpu.trace_start"() <{level = 10 : i32, message = "tbd,tdp->tbp"}> : () -> ()
    %cst = arith.constant dense<0.000000e+00> : vector<2x16x128xf32>
    %38 = tpu.matmul %36, %37, %cst {dimension_numbers = #tpu.dot_dimension_numbers<[2], [1], [1], [2], [0, 0, 0, 1, 1, 2], [0], [0]>} : vector<2x16x32xbf16>, vector<2x32x128xbf16>, vector<2x16x128xf32> -> vector<2x16x128xf32>
    "tpu.trace_stop"() : () -> ()
    %c0_24 = arith.constant 0 : index
    %c0_25 = arith.constant 0 : index
    %c0_26 = arith.constant 0 : index
    %39 = vector.load %arg7[%c0_24, %c0_25, %c0_26] : memref<2x16x128xf32, #tpu.memory_space<vmem>>, vector<2x16x128xf32>
    tpu.vector_store %arg7[%c0_24, %c0_25, %c0_26], %38 {strides = array<i32>} : memref<2x16x128xf32, #tpu.memory_space<vmem>>, vector<2x16x128xf32>,
    %40 = tpu.iota {dimensions = array<i32: 0>} : vector<16x128xi32>
    %c7_i32 = arith.constant 7 : i32
    %41 = vector.broadcast %c7_i32 : i32 to vector<16x128xi32>
    %42 = arith.andi %40, %41 : vector<16x128xi32>
    %c1_i32_27 = arith.constant 1 : i32
    %43 = vector.broadcast %c1_i32_27 : i32 to vector<16x128xi32>
    %44 = arith.andi %42, %43 : vector<16x128xi32>
    %c0_i32_28 = arith.constant 0 : i32
    %45 = vector.broadcast %c0_i32_28 : i32 to vector<16x128xi32>
    %46 = arith.cmpi eq, %44, %45 : vector<16x128xi32>
    %c2_i32_29 = arith.constant 2 : i32
    %47 = vector.broadcast %c2_i32_29 : i32 to vector<16x128xi32>
    %48 = arith.andi %42, %47 : vector<16x128xi32>
    %c0_i32_30 = arith.constant 0 : i32
    %49 = vector.broadcast %c0_i32_30 : i32 to vector<16x128xi32>
    %50 = arith.cmpi eq, %48, %49 : vector<16x128xi32>
    %51 = arith.xori %46, %50 : vector<16x128xi1>
    %cst_31 = arith.constant dense<true> : vector<16x128xi1>
    %52 = arith.xori %51, %cst_31 : vector<16x128xi1>
    %c2_i32_32 = arith.constant 2 : i32
    %53 = vector.broadcast %c2_i32_32 : i32 to vector<16x128xi32>
    %54 = arith.andi %42, %53 : vector<16x128xi32>
    %c0_i32_33 = arith.constant 0 : i32
    %55 = vector.broadcast %c0_i32_33 : i32 to vector<16x128xi32>
    %56 = arith.cmpi eq, %54, %55 : vector<16x128xi32>
    %c4_i32 = arith.constant 4 : i32
    %57 = vector.broadcast %c4_i32 : i32 to vector<16x128xi32>
    %58 = arith.andi %42, %57 : vector<16x128xi32>
    %c0_i32_34 = arith.constant 0 : i32
    %59 = vector.broadcast %c0_i32_34 : i32 to vector<16x128xi32>
    %60 = arith.cmpi eq, %58, %59 : vector<16x128xi32>
    %61 = arith.xori %56, %60 : vector<16x128xi1>
    %cst_35 = arith.constant dense<true> : vector<16x128xi1>
    %62 = arith.xori %61, %cst_35 : vector<16x128xi1>
    %c1_i32_36 = arith.constant 1 : i32
    %63 = vector.broadcast %c1_i32_36 : i32 to vector<16x128xi32>
    %64 = arith.andi %42, %63 : vector<16x128xi32>
    %c0_i32_37 = arith.constant 0 : i32
    %65 = vector.broadcast %c0_i32_37 : i32 to vector<16x128xi32>
    %66 = arith.cmpi eq, %64, %65 : vector<16x128xi32>
    %c4_i32_38 = arith.constant 4 : i32
    %67 = vector.broadcast %c4_i32_38 : i32 to vector<16x128xi32>
    %68 = arith.andi %42, %67 : vector<16x128xi32>
    %c0_i32_39 = arith.constant 0 : i32
    %69 = vector.broadcast %c0_i32_39 : i32 to vector<16x128xi32>
    %70 = arith.cmpi eq, %68, %69 : vector<16x128xi32>
    %71 = arith.xori %66, %70 : vector<16x128xi1>
    %cst_40 = arith.constant dense<true> : vector<16x128xi1>
    %72 = arith.xori %71, %cst_40 : vector<16x128xi1>
    %c4_i32_41 = arith.constant 4 : i32
    %73 = vector.broadcast %c4_i32_41 : i32 to vector<16x128xi32>
    %74 = arith.andi %42, %73 : vector<16x128xi32>
    %c0_i32_42 = arith.constant 0 : i32
    %75 = vector.broadcast %c0_i32_42 : i32 to vector<16x128xi32>
    %76 = arith.cmpi eq, %74, %75 : vector<16x128xi32>
    %c8_i32 = arith.constant 8 : i32
    %77 = vector.broadcast %c8_i32 : i32 to vector<16x128xi32>
    %78 = arith.andi %42, %77 : vector<16x128xi32>
    %c0_i32_43 = arith.constant 0 : i32
    %79 = vector.broadcast %c0_i32_43 : i32 to vector<16x128xi32>
    %80 = arith.cmpi eq, %78, %79 : vector<16x128xi32>
    %81 = arith.xori %76, %80 : vector<16x128xi1>
    %cst_44 = arith.constant dense<true> : vector<16x128xi1>
    %82 = arith.xori %81, %cst_44 : vector<16x128xi1>
    %c2_i32_45 = arith.constant 2 : i32
    %83 = vector.broadcast %c2_i32_45 : i32 to vector<16x128xi32>
    %84 = arith.andi %42, %83 : vector<16x128xi32>
    %c0_i32_46 = arith.constant 0 : i32
    %85 = vector.broadcast %c0_i32_46 : i32 to vector<16x128xi32>
    %86 = arith.cmpi eq, %84, %85 : vector<16x128xi32>
    %c8_i32_47 = arith.constant 8 : i32
    %87 = vector.broadcast %c8_i32_47 : i32 to vector<16x128xi32>
    %88 = arith.andi %42, %87 : vector<16x128xi32>
    %c0_i32_48 = arith.constant 0 : i32
    %89 = vector.broadcast %c0_i32_48 : i32 to vector<16x128xi32>
    %90 = arith.cmpi eq, %88, %89 : vector<16x128xi32>
    %91 = arith.xori %86, %90 : vector<16x128xi1>
    %cst_49 = arith.constant dense<true> : vector<16x128xi1>
    %92 = arith.xori %91, %cst_49 : vector<16x128xi1>
    %c1_i32_50 = arith.constant 1 : i32
    %93 = vector.broadcast %c1_i32_50 : i32 to vector<16x128xi32>
    %94 = arith.andi %42, %93 : vector<16x128xi32>
    %c0_i32_51 = arith.constant 0 : i32
    %95 = vector.broadcast %c0_i32_51 : i32 to vector<16x128xi32>
    %96 = arith.cmpi eq, %94, %95 : vector<16x128xi32>
    %c8_i32_52 = arith.constant 8 : i32
    %97 = vector.broadcast %c8_i32_52 : i32 to vector<16x128xi32>
    %98 = arith.andi %42, %97 : vector<16x128xi32>
    %c0_i32_53 = arith.constant 0 : i32
    %99 = vector.broadcast %c0_i32_53 : i32 to vector<16x128xi32>
    %100 = arith.cmpi eq, %98, %99 : vector<16x128xi32>
    %101 = arith.xori %96, %100 : vector<16x128xi1>
    %cst_54 = arith.constant dense<true> : vector<16x128xi1>
    %102 = arith.xori %101, %cst_54 : vector<16x128xi1>
    %c0_55 = arith.constant 0 : index
    %c0_56 = arith.constant 0 : index
    %c0_57 = arith.constant 0 : index
    %103 = vector.load %arg7[%c0_55, %c0_56, %c0_57] : memref<2x16x128xf32, #tpu.memory_space<vmem>>, vector<1x16x128xf32>
    %104 = vector.shape_cast %103 : vector<1x16x128xf32> to vector<16x128xf32>
    %105 = vector.extract_strided_slice %104 {offsets = [1, 0], sizes = [15, 128], strides = [1, 1]} : vector<16x128xf32> to vector<15x128xf32>
    %106 = vector.extract_strided_slice %104 {offsets = [0, 0], sizes = [1, 128], strides = [1, 1]} : vector<16x128xf32> to vector<1x128xf32>
    %107 = tpu.concatenate %105, %106 in 0 : vector<15x128xf32>, vector<1x128xf32> -> vector<16x128xf32>
    %108 = vector.extract_strided_slice %104 {offsets = [15, 0], sizes = [1, 128], strides = [1, 1]} : vector<16x128xf32> to vector<1x128xf32>
    %109 = vector.extract_strided_slice %104 {offsets = [0, 0], sizes = [15, 128], strides = [1, 1]} : vector<16x128xf32> to vector<15x128xf32>
    %110 = tpu.concatenate %108, %109 in 0 : vector<1x128xf32>, vector<15x128xf32> -> vector<16x128xf32>
    %111 = arith.select %46, %107, %110 : vector<16x128xi1>, vector<16x128xf32>
    %112 = arith.minimumf %104, %111 : vector<16x128xf32>
    %113 = arith.maximumf %104, %111 : vector<16x128xf32>
    %114 = arith.select %52, %112, %113 : vector<16x128xi1>, vector<16x128xf32>
    %115 = vector.extract_strided_slice %114 {offsets = [2, 0], sizes = [14, 128], strides = [1, 1]} : vector<16x128xf32> to vector<14x128xf32>
    %116 = vector.extract_strided_slice %114 {offsets = [0, 0], sizes = [2, 128], strides = [1, 1]} : vector<16x128xf32> to vector<2x128xf32>
    %117 = tpu.concatenate %115, %116 in 0 : vector<14x128xf32>, vector<2x128xf32> -> vector<16x128xf32>
    %118 = vector.extract_strided_slice %114 {offsets = [14, 0], sizes = [2, 128], strides = [1, 1]} : vector<16x128xf32> to vector<2x128xf32>
    %119 = vector.extract_strided_slice %114 {offsets = [0, 0], sizes = [14, 128], strides = [1, 1]} : vector<16x128xf32> to vector<14x128xf32>
    %120 = tpu.concatenate %118, %119 in 0 : vector<2x128xf32>, vector<14x128xf32> -> vector<16x128xf32>
    %121 = arith.select %56, %117, %120 : vector<16x128xi1>, vector<16x128xf32>
    %122 = arith.minimumf %114, %121 : vector<16x128xf32>
    %123 = arith.maximumf %114, %121 : vector<16x128xf32>
    %124 = arith.select %62, %122, %123 : vector<16x128xi1>, vector<16x128xf32>
    %125 = vector.extract_strided_slice %124 {offsets = [1, 0], sizes = [15, 128], strides = [1, 1]} : vector<16x128xf32> to vector<15x128xf32>
    %126 = vector.extract_strided_slice %124 {offsets = [0, 0], sizes = [1, 128], strides = [1, 1]} : vector<16x128xf32> to vector<1x128xf32>
    %127 = tpu.concatenate %125, %126 in 0 : vector<15x128xf32>, vector<1x128xf32> -> vector<16x128xf32>
    %128 = vector.extract_strided_slice %124 {offsets = [15, 0], sizes = [1, 128], strides = [1, 1]} : vector<16x128xf32> to vector<1x128xf32>
    %129 = vector.extract_strided_slice %124 {offsets = [0, 0], sizes = [15, 128], strides = [1, 1]} : vector<16x128xf32> to vector<15x128xf32>
    %130 = tpu.concatenate %128, %129 in 0 : vector<1x128xf32>, vector<15x128xf32> -> vector<16x128xf32>
    %131 = arith.select %66, %127, %130 : vector<16x128xi1>, vector<16x128xf32>
    %132 = arith.minimumf %124, %131 : vector<16x128xf32>
    %133 = arith.maximumf %124, %131 : vector<16x128xf32>
    %134 = arith.select %72, %132, %133 : vector<16x128xi1>, vector<16x128xf32>
    %135 = vector.extract_strided_slice %134 {offsets = [4, 0], sizes = [12, 128], strides = [1, 1]} : vector<16x128xf32> to vector<12x128xf32>
    %136 = vector.extract_strided_slice %134 {offsets = [0, 0], sizes = [4, 128], strides = [1, 1]} : vector<16x128xf32> to vector<4x128xf32>
    %137 = tpu.concatenate %135, %136 in 0 : vector<12x128xf32>, vector<4x128xf32> -> vector<16x128xf32>
    %138 = vector.extract_strided_slice %134 {offsets = [12, 0], sizes = [4, 128], strides = [1, 1]} : vector<16x128xf32> to vector<4x128xf32>
    %139 = vector.extract_strided_slice %134 {offsets = [0, 0], sizes = [12, 128], strides = [1, 1]} : vector<16x128xf32> to vector<12x128xf32>
    %140 = tpu.concatenate %138, %139 in 0 : vector<4x128xf32>, vector<12x128xf32> -> vector<16x128xf32>
    %141 = arith.select %76, %137, %140 : vector<16x128xi1>, vector<16x128xf32>
    %142 = arith.minimumf %134, %141 : vector<16x128xf32>
    %143 = arith.maximumf %134, %141 : vector<16x128xf32>
    %144 = arith.select %82, %142, %143 : vector<16x128xi1>, vector<16x128xf32>
    %145 = vector.extract_strided_slice %144 {offsets = [2, 0], sizes = [14, 128], strides = [1, 1]} : vector<16x128xf32> to vector<14x128xf32>
    %146 = vector.extract_strided_slice %144 {offsets = [0, 0], sizes = [2, 128], strides = [1, 1]} : vector<16x128xf32> to vector<2x128xf32>
    %147 = tpu.concatenate %145, %146 in 0 : vector<14x128xf32>, vector<2x128xf32> -> vector<16x128xf32>
    %148 = vector.extract_strided_slice %144 {offsets = [14, 0], sizes = [2, 128], strides = [1, 1]} : vector<16x128xf32> to vector<2x128xf32>
    %149 = vector.extract_strided_slice %144 {offsets = [0, 0], sizes = [14, 128], strides = [1, 1]} : vector<16x128xf32> to vector<14x128xf32>
    %150 = tpu.concatenate %148, %149 in 0 : vector<2x128xf32>, vector<14x128xf32> -> vector<16x128xf32>
    %151 = arith.select %86, %147, %150 : vector<16x128xi1>, vector<16x128xf32>
    %152 = arith.minimumf %144, %151 : vector<16x128xf32>
    %153 = arith.maximumf %144, %151 : vector<16x128xf32>
    %154 = arith.select %92, %152, %153 : vector<16x128xi1>, vector<16x128xf32>
    %155 = vector.extract_strided_slice %154 {offsets = [1, 0], sizes = [15, 128], strides = [1, 1]} : vector<16x128xf32> to vector<15x128xf32>
    %156 = vector.extract_strided_slice %154 {offsets = [0, 0], sizes = [1, 128], strides = [1, 1]} : vector<16x128xf32> to vector<1x128xf32>
    %157 = tpu.concatenate %155, %156 in 0 : vector<15x128xf32>, vector<1x128xf32> -> vector<16x128xf32>
    %158 = vector.extract_strided_slice %154 {offsets = [15, 0], sizes = [1, 128], strides = [1, 1]} : vector<16x128xf32> to vector<1x128xf32>
    %159 = vector.extract_strided_slice %154 {offsets = [0, 0], sizes = [15, 128], strides = [1, 1]} : vector<16x128xf32> to vector<15x128xf32>
    %160 = tpu.concatenate %158, %159 in 0 : vector<1x128xf32>, vector<15x128xf32> -> vector<16x128xf32>
    %161 = arith.select %96, %157, %160 : vector<16x128xi1>, vector<16x128xf32>
    %162 = arith.minimumf %154, %161 : vector<16x128xf32>
    %163 = arith.maximumf %154, %161 : vector<16x128xf32>
    %164 = arith.select %102, %162, %163 : vector<16x128xi1>, vector<16x128xf32>
    %165 = vector.extract_strided_slice %164 {offsets = [0, 0], sizes = [8, 128], strides = [1, 1]} : vector<16x128xf32> to vector<8x128xf32>
    %166 = vector.extract_strided_slice %164 {offsets = [8, 0], sizes = [8, 128], strides = [1, 1]} : vector<16x128xf32> to vector<8x128xf32>
    %167 = arith.subf %165, %166 : vector<8x128xf32>
    %168 = arith.mulf %167, %167 : vector<8x128xf32>
    %cst_58 = arith.constant dense<0.000000e+00> : vector<128xf32>
    %169 = vector.multi_reduction <add>, %168, %cst_58 [0] : vector<8x128xf32> to vector<128xf32>
    %170 = vector.shape_cast %169 : vector<128xf32> to vector<1x128xf32>
    %cst_59 = arith.constant 1.250000e-01 : f32
    %171 = vector.broadcast %cst_59 : f32 to vector<1x128xf32>
    %172 = arith.mulf %170, %171 : vector<1x128xf32>
    %c0_60 = arith.constant 0 : index
    %c0_61 = arith.constant 0 : index
    %c0_62 = arith.constant 0 : index
    %173 = vector.load %arg5[%c0_60, %c0_61, %c0_62] : memref<1x2x128xf32, #tpu.memory_space<vmem>>, vector<1x1x128xf32>
    %174 = vector.shape_cast %173 : vector<1x1x128xf32> to vector<1x128xf32>
    %175 = vector.shape_cast %172 : vector<1x128xf32> to vector<1x1x128xf32>
    tpu.vector_store %arg5[%c0_60, %c0_61, %c0_62], %175 {strides = array<i32>} : memref<1x2x128xf32, #tpu.memory_space<vmem>>, vector<1x1x128xf32>,
    %c1_63 = arith.constant 1 : index
    %c0_64 = arith.constant 0 : index
    %c0_65 = arith.constant 0 : index
    %176 = vector.load %arg7[%c1_63, %c0_64, %c0_65] : memref<2x16x128xf32, #tpu.memory_space<vmem>>, vector<1x16x128xf32>
    %177 = vector.shape_cast %176 : vector<1x16x128xf32> to vector<16x128xf32>
    %178 = vector.extract_strided_slice %177 {offsets = [1, 0], sizes = [15, 128], strides = [1, 1]} : vector<16x128xf32> to vector<15x128xf32>
    %179 = vector.extract_strided_slice %177 {offsets = [0, 0], sizes = [1, 128], strides = [1, 1]} : vector<16x128xf32> to vector<1x128xf32>
    %180 = tpu.concatenate %178, %179 in 0 : vector<15x128xf32>, vector<1x128xf32> -> vector<16x128xf32>
    %181 = vector.extract_strided_slice %177 {offsets = [15, 0], sizes = [1, 128], strides = [1, 1]} : vector<16x128xf32> to vector<1x128xf32>
    %182 = vector.extract_strided_slice %177 {offsets = [0, 0], sizes = [15, 128], strides = [1, 1]} : vector<16x128xf32> to vector<15x128xf32>
    %183 = tpu.concatenate %181, %182 in 0 : vector<1x128xf32>, vector<15x128xf32> -> vector<16x128xf32>
    %184 = arith.select %46, %180, %183 : vector<16x128xi1>, vector<16x128xf32>
    %185 = arith.minimumf %177, %184 : vector<16x128xf32>
    %186 = arith.maximumf %177, %184 : vector<16x128xf32>
    %187 = arith.select %52, %185, %186 : vector<16x128xi1>, vector<16x128xf32>
    %188 = vector.extract_strided_slice %187 {offsets = [2, 0], sizes = [14, 128], strides = [1, 1]} : vector<16x128xf32> to vector<14x128xf32>
    %189 = vector.extract_strided_slice %187 {offsets = [0, 0], sizes = [2, 128], strides = [1, 1]} : vector<16x128xf32> to vector<2x128xf32>
    %190 = tpu.concatenate %188, %189 in 0 : vector<14x128xf32>, vector<2x128xf32> -> vector<16x128xf32>
    %191 = vector.extract_strided_slice %187 {offsets = [14, 0], sizes = [2, 128], strides = [1, 1]} : vector<16x128xf32> to vector<2x128xf32>
    %192 = vector.extract_strided_slice %187 {offsets = [0, 0], sizes = [14, 128], strides = [1, 1]} : vector<16x128xf32> to vector<14x128xf32>
    %193 = tpu.concatenate %191, %192 in 0 : vector<2x128xf32>, vector<14x128xf32> -> vector<16x128xf32>
    %194 = arith.select %56, %190, %193 : vector<16x128xi1>, vector<16x128xf32>
    %195 = arith.minimumf %187, %194 : vector<16x128xf32>
    %196 = arith.maximumf %187, %194 : vector<16x128xf32>
    %197 = arith.select %62, %195, %196 : vector<16x128xi1>, vector<16x128xf32>
    %198 = vector.extract_strided_slice %197 {offsets = [1, 0], sizes = [15, 128], strides = [1, 1]} : vector<16x128xf32> to vector<15x128xf32>
    %199 = vector.extract_strided_slice %197 {offsets = [0, 0], sizes = [1, 128], strides = [1, 1]} : vector<16x128xf32> to vector<1x128xf32>
    %200 = tpu.concatenate %198, %199 in 0 : vector<15x128xf32>, vector<1x128xf32> -> vector<16x128xf32>
    %201 = vector.extract_strided_slice %197 {offsets = [15, 0], sizes = [1, 128], strides = [1, 1]} : vector<16x128xf32> to vector<1x128xf32>
    %202 = vector.extract_strided_slice %197 {offsets = [0, 0], sizes = [15, 128], strides = [1, 1]} : vector<16x128xf32> to vector<15x128xf32>
    %203 = tpu.concatenate %201, %202 in 0 : vector<1x128xf32>, vector<15x128xf32> -> vector<16x128xf32>
    %204 = arith.select %66, %200, %203 : vector<16x128xi1>, vector<16x128xf32>
    %205 = arith.minimumf %197, %204 : vector<16x128xf32>
    %206 = arith.maximumf %197, %204 : vector<16x128xf32>
    %207 = arith.select %72, %205, %206 : vector<16x128xi1>, vector<16x128xf32>
    %208 = vector.extract_strided_slice %207 {offsets = [4, 0], sizes = [12, 128], strides = [1, 1]} : vector<16x128xf32> to vector<12x128xf32>
    %209 = vector.extract_strided_slice %207 {offsets = [0, 0], sizes = [4, 128], strides = [1, 1]} : vector<16x128xf32> to vector<4x128xf32>
    %210 = tpu.concatenate %208, %209 in 0 : vector<12x128xf32>, vector<4x128xf32> -> vector<16x128xf32>
    %211 = vector.extract_strided_slice %207 {offsets = [12, 0], sizes = [4, 128], strides = [1, 1]} : vector<16x128xf32> to vector<4x128xf32>
    %212 = vector.extract_strided_slice %207 {offsets = [0, 0], sizes = [12, 128], strides = [1, 1]} : vector<16x128xf32> to vector<12x128xf32>
    %213 = tpu.concatenate %211, %212 in 0 : vector<4x128xf32>, vector<12x128xf32> -> vector<16x128xf32>
    %214 = arith.select %76, %210, %213 : vector<16x128xi1>, vector<16x128xf32>
    %215 = arith.minimumf %207, %214 : vector<16x128xf32>
    %216 = arith.maximumf %207, %214 : vector<16x128xf32>
    %217 = arith.select %82, %215, %216 : vector<16x128xi1>, vector<16x128xf32>
    %218 = vector.extract_strided_slice %217 {offsets = [2, 0], sizes = [14, 128], strides = [1, 1]} : vector<16x128xf32> to vector<14x128xf32>
    %219 = vector.extract_strided_slice %217 {offsets = [0, 0], sizes = [2, 128], strides = [1, 1]} : vector<16x128xf32> to vector<2x128xf32>
    %220 = tpu.concatenate %218, %219 in 0 : vector<14x128xf32>, vector<2x128xf32> -> vector<16x128xf32>
    %221 = vector.extract_strided_slice %217 {offsets = [14, 0], sizes = [2, 128], strides = [1, 1]} : vector<16x128xf32> to vector<2x128xf32>
    %222 = vector.extract_strided_slice %217 {offsets = [0, 0], sizes = [14, 128], strides = [1, 1]} : vector<16x128xf32> to vector<14x128xf32>
    %223 = tpu.concatenate %221, %222 in 0 : vector<2x128xf32>, vector<14x128xf32> -> vector<16x128xf32>
    %224 = arith.select %86, %220, %223 : vector<16x128xi1>, vector<16x128xf32>
    %225 = arith.minimumf %217, %224 : vector<16x128xf32>
    %226 = arith.maximumf %217, %224 : vector<16x128xf32>
    %227 = arith.select %92, %225, %226 : vector<16x128xi1>, vector<16x128xf32>
    %228 = vector.extract_strided_slice %227 {offsets = [1, 0], sizes = [15, 128], strides = [1, 1]} : vector<16x128xf32> to vector<15x128xf32>
    %229 = vector.extract_strided_slice %227 {offsets = [0, 0], sizes = [1, 128], strides = [1, 1]} : vector<16x128xf32> to vector<1x128xf32>
    %230 = tpu.concatenate %228, %229 in 0 : vector<15x128xf32>, vector<1x128xf32> -> vector<16x128xf32>
    %231 = vector.extract_strided_slice %227 {offsets = [15, 0], sizes = [1, 128], strides = [1, 1]} : vector<16x128xf32> to vector<1x128xf32>
    %232 = vector.extract_strided_slice %227 {offsets = [0, 0], sizes = [15, 128], strides = [1, 1]} : vector<16x128xf32> to vector<15x128xf32>
    %233 = tpu.concatenate %231, %232 in 0 : vector<1x128xf32>, vector<15x128xf32> -> vector<16x128xf32>
    %234 = arith.select %96, %230, %233 : vector<16x128xi1>, vector<16x128xf32>
    %235 = arith.minimumf %227, %234 : vector<16x128xf32>
    %236 = arith.maximumf %227, %234 : vector<16x128xf32>
    %237 = arith.select %102, %235, %236 : vector<16x128xi1>, vector<16x128xf32>
    %238 = vector.extract_strided_slice %237 {offsets = [0, 0], sizes = [8, 128], strides = [1, 1]} : vector<16x128xf32> to vector<8x128xf32>
    %239 = vector.extract_strided_slice %237 {offsets = [8, 0], sizes = [8, 128], strides = [1, 1]} : vector<16x128xf32> to vector<8x128xf32>
    %240 = arith.subf %238, %239 : vector<8x128xf32>
    %241 = arith.mulf %240, %240 : vector<8x128xf32>
    %cst_66 = arith.constant dense<0.000000e+00> : vector<128xf32>
    %242 = vector.multi_reduction <add>, %241, %cst_66 [0] : vector<8x128xf32> to vector<128xf32>
    %243 = vector.shape_cast %242 : vector<128xf32> to vector<1x128xf32>
    %cst_67 = arith.constant 1.250000e-01 : f32
    %244 = vector.broadcast %cst_67 : f32 to vector<1x128xf32>
    %245 = arith.mulf %243, %244 : vector<1x128xf32>
    %c0_68 = arith.constant 0 : index
    %c1_69 = arith.constant 1 : index
    %c0_70 = arith.constant 0 : index
    %246 = vector.load %arg5[%c0_68, %c1_69, %c0_70] : memref<1x2x128xf32, #tpu.memory_space<vmem>>, vector<1x1x128xf32>
    %247 = vector.shape_cast %246 : vector<1x1x128xf32> to vector<1x128xf32>
    %248 = vector.shape_cast %245 : vector<1x128xf32> to vector<1x1x128xf32>
    tpu.vector_store %arg5[%c0_68, %c1_69, %c0_70], %248 {strides = array<i32>} : memref<1x2x128xf32, #tpu.memory_space<vmem>>, vector<1x1x128xf32>,
    return
  }
  func.func @transform_0(%arg0: i32, %arg1: memref<4xi32, #tpu.memory_space<smem>>, %arg2: memref<4xi32, #tpu.memory_space<smem>>) -> (i32, i32, i32) {
    %c0_i32 = arith.constant 0 : i32
    %c0_i32_0 = arith.constant 0 : i32
    %c0_i32_1 = arith.constant 0 : i32
    %c0_i32_2 = arith.constant 0 : i32
    return %c0_i32, %c0_i32_0, %c0_i32_1 : i32, i32, i32
  }
  func.func @transform_1(%arg0: i32, %arg1: memref<4xi32, #tpu.memory_space<smem>>, %arg2: memref<4xi32, #tpu.memory_space<smem>>) -> (i32, i32, i32) {
    %c0_i32 = arith.constant 0 : i32
    %c0_i32_0 = arith.constant 0 : i32
    %c0_i32_1 = arith.constant 0 : i32
    return %arg0, %c0_i32, %c0_i32_0 : i32, i32, i32
  }
  func.func @transform_2(%arg0: i32, %arg1: memref<4xi32, #tpu.memory_space<smem>>, %arg2: memref<4xi32, #tpu.memory_space<smem>>) -> (i32, i32, i32) {
    %c0_i32 = arith.constant 0 : i32
    %c0_i32_0 = arith.constant 0 : i32
    %c0_i32_1 = arith.constant 0 : i32
    return %arg0, %c0_i32, %c0_i32_0 : i32, i32, i32
  }
}

</mosaic_0001>

<bundles_post_ra>
// kernel: tpu_custom_call.1
= control target key start
LH: loop header
LB: loop body
LE: loop exit
PB: predicated region body
PF: predicated region fallthrough
CT: control target
= control target key end

     0   :  { %6 = vsyncpa [#allocation3], 0  ;;  %s131_s0 = inlined_call_operand.hbm [shape: f32[16,128], index: 0, kind: input, shape index: {}]   ;;  %s132_s1 = inlined_call_operand.hbm [shape: f32[16,128], index: 1, kind: output, shape index: {}]  }
   0x1   :  { %7 = vsyncpa [#allocation4], 0  ;;  %s12_s8 = sshll.u32 %s131_s0, 4  ;;  %s111_s9 = smov [#allocation2]   ;;  %s13_s8 = int_to_ptr.hbm [resolvable:$true] %s12_s8 }
   0x2   :  { %s14_s10 = sshll.u32 %s111_s9, 4  ;;  %s112_s11 = smov 128   ;;  %s15_s10 = int_to_ptr.vmem [resolvable:$true] %s14_s10 }
   0x3   :  { %s113_s12 = smov 8  }
   0x4   :  { %20 = dma.hbm_to_vmem [thread:$0]  %s13_s8, 256, %s15_s10, [#allocation3], %s112_s11, %s112_s11, %s113_s12  }
   0x5   :  { %107 = dma.done.wait [#allocation3], 256  }
   0x6   :  { %108 = vsyncadd [#allocation3], 4294967040  ;;  %v29_v0 = vlaneseq  ;;  %v25_v2 = vld [vmem:[#allocation2] sm:$0xff]  ;;  %v26_v3 = vld [vmem:[#allocation2 + $0x8] sm:$0xff]  ;;  %s114_s13 = smov [#allocation5]   ;;  %s42_s0 = sshll.u32 %s132_s1, 4  ;;  %s43_s0 = int_to_ptr.hbm [resolvable:$true] %s42_s0 }
   0x7   :  { %s40_s14 = sshll.u32 %s114_s13, 4  ;;  %v27_v4 = vrot.slane %v25_v2, 7  ;;  %v28_v5 = vrot.slane %v26_v3, 7  ;;  %s41_s14 = int_to_ptr.vmem [resolvable:$true] %s40_s14 }
   0x8   :  { %v30_v1 = vshrl.u32 %v29_v0, 7 }
   0xa   :  { %vm31_vm0 = vcmp.lt.s32.totalorder %v30_v1, 1 }
   0xb   :  { %v33_v6 = vsel %vm31_vm0, %v28_v5, %v27_v4  ;;  %v32_v7 = vsel %vm31_vm0, %v27_v4, %v28_v5 }
   0xc   :  { %34 = vst [vmem:[#allocation5] sm:$0xff] %v33_v6 }
   0xd   :  { %35 = vst [vmem:[#allocation5 + $0x8] sm:$0xff] %v32_v7 }
   0xe   :  { %48 = dma.vmem_to_hbm [thread:$0]  %s41_s14, 256, %s43_s0, [#allocation4], %s112_s11, %s112_s11, %s113_s12  }
   0xf   :  { %109 = dma.done.wait [#allocation4], 256  }
  0x10   :  { %110 = vsyncadd [#allocation4], 4294967040 }
  0x11   :  { %53 = vsyncpa [#allocation3], 1 }
  0x12   :  { %54 = vsyncpa [#allocation4], 1 }

// kernel: tpu_custom_call.1
= control target key start
LH: loop header
LB: loop body
LE: loop exit
PB: predicated region body
PF: predicated region fallthrough
CT: control target
= control target key end

     0   :  { %s1038_s21 = smov [#allocation5]   ;;  %s1039_s22 = smov [#allocation6]   ;;  %s1513_s0 = inlined_call_operand.hbm [shape: s32[4], index: 0, kind: input, shape index: {}]   ;;  %s1514_s2 = inlined_call_operand.hbm [shape: bf16[3,8,32], index: 2, kind: input, shape index: {}]   ;;  %s1515_s3 = inlined_call_operand.hbm [shape: bf16[4,32,128], index: 3, kind: input, shape index: {}]   ;;  %s1516_s4 = inlined_call_operand.hbm [shape: f32[2,2,128], index: 4, kind: output, shape index: {}]   ;;  %s1517_s1 = inlined_call_operand.hbm [shape: s32[4], index: 1, kind: input, shape index: {}]  }
   0x1   :  { %s10_s17 = sshll.u32 %s1513_s0, 4  ;;  %s15_s20 = sshll.u32 %s1517_s1, 4  ;;  %s11_s17 = int_to_ptr.hbm [resolvable:$true] %s10_s17  ;;  %s16_s20 = int_to_ptr.hbm [resolvable:$true] %s15_s20 }
   0x2   :  { %13 = dma.hbm_to_smem %s11_s17, 16, %s1038_s21, [#allocation4] }
   0x3   :  { %18 = dma.hbm_to_smem %s16_s20, 16, %s1039_s22, [#allocation4] }
   0x4   :  { %1008 = dma.done.wait [#allocation4], 32 }
   0x5   :  { %1009 = vsyncadd [#allocation4], 4294967264 }
   0x6   :  { %21 = sfence }
   0x7   :  { %22 = vsyncpa [#allocation8], 0 }
   0x8   :  { %23 = vsyncpa [#allocation11], 0 }
   0x9   :  { %25 = vsyncpa [#allocation11 + $0x1], 0 }
   0xa   :  { %26 = vsyncpa [#allocation9], 0 }
   0xb   :  { %28 = vsyncpa [#allocation9 + $0x1], 0  ;;  %s1075_s23 = smov 0   ;;  %s1077_s0 = smov 0  }
   0xc   :  { %s1079_s24 = smov 0   ;;  %s1081_s1 = smov 0  }
   0xd LB: > { %s1096_s25 = sadd.s32 4294967295, %s1036_s1   ;;  %s763_s26 = sadd.s32 4294967294, %s1036_s1   ;;  %s1036_s1 = sphi %s1081_s1, %s1601_s1   ;;  %s1032_s24 = sphi %s1079_s24, %s1600_s24   ;;  %s1028_s0 = sphi %s1077_s0, %s1599_s0   ;;  %s1024_s23 = sphi %s1075_s23, %s1598_s23  }
   0xe   : > { %p75_p0 = scmp.ne.s32.totalorder %s1028_s0, %s1024_s23  ;;  %p76_p1 = scmp.eq.s32.totalorder %s1096_s25, 0 }
   0xf   : > { %p99_p2 = scmp.eq.s32.totalorder %s1096_s25, 1  ;;  %p105_p3 = scmp.eq.s32.totalorder %s763_s26, 1 }
  0x10   : > { %p1105_p4 = por %p76_p1, %p75_p0  ;;  %p764_p5 = scmp.ge.s32.totalorder %s1036_s1, 1 }
  0x11   : > { %p1110_p6 = por %p105_p3, %p75_p0  ;;  %p112_p7 = scmp.lt.s32.totalorder %s1036_s1, 3 }
  0x12   : > { %s123_s5 = sshll.u32 %s1514_s2, 4  ;;  %s1040_s7 = smov [#allocation7]   ;;  %s124_s5 = int_to_ptr.hbm [resolvable:$true] %s123_s5 }
  0x13   : > { %p1118_p8 = pnand %p764_p5, %p112_p7  ;;  %s125_s8 = sshll.u32 %s1040_s7, 4  ;;  %s126_s8 = int_to_ptr.vmem [resolvable:$true] %s125_s8 }
  0x14   : > { %s1128_s9 = sadd.s32 1, %s1036_s1   ;;  %s1041_s10 = smov 64  }
  0x15   : > { %p826_p9 = pneg %p1118_p8  ;;  %s1042_s11 = smov 4  }
  0x16   : > { %s59_s12 = ssub.s32 %s1036_s1, %s1128_s9  ;;  %s62_s13 = sadd.s32 1, %s1032_s24 }
  0x17   : > { %p827_p10 = pnand %p826_p9, %p76_p1  ;;  %p60_p12 = scmp.eq.s32.totalorder %s59_s12, 0 }
  0x18   : > { %p69_p13 = scmp.ne.s32.totalorder %s1032_s24, %s1028_s0  ;;  %p70_p0 = scmp.eq.s32.totalorder %s1036_s1, 0 }
  0x19   : > { %829 = dma.hbm_to_vmem [thread:$0]  (!%p827_p10), %s124_s5, 192, %s126_s8, [#allocation8], %s1041_s10, %s1041_s10, %s1042_s11  }
  0x1a   : > { %s1140_s14 = scalar_select %p60_p12, %s1032_s24, %s62_s13  }
  0x1b   : > { %p1144_p3 = por %p99_p2, %p69_p13  ;;  %p839_p5 = scmp.lt.s32.totalorder %s1036_s1, 2 }
  0x1c   : > { %s139_s16 = sand.u32 1, %s1032_s24   ;;  %s811_s17 = sshll.u32 %s1036_s1, 5 }
  0x1d   : > { %p71_p7 = por %p70_p0, %p69_p13  ;;  %s767_s18 = sshll.u32 %s139_s16, 5 }
  0x1e   : > { %s149_s21 = scalar_lea.hbm %s1515_s3, %s811_s17  ;;  %s143_s26 = scalar_lea.vmem [#allocation10], %s767_s18 }
  0x1f   : > { %s150_s22 = sshll.u32 %s149_s21, 4  ;;  %s152_s29 = sshll.u32 %s143_s26, 4  ;;  %s151_s22 = int_to_ptr.hbm [resolvable:$true] %s150_s22  ;;  %s153_s29 = int_to_ptr.vmem [resolvable:$true] %s152_s29 }
  0x20   : > { %p1154_p9 = pnand %p839_p5, %p71_p7  ;;  %s140_s5 = scalar_lea.sflag [#allocation11], %s139_s16 }
  0x21   : > { %s934_s7 = sshra.s32 %s151_s22, 4  ;;  %s941_s17 = scalar_lea.hbm %s1515_s3, 64  ;;  %s935_s7 = int_to_ptr.hbm [resolvable:$true] %s934_s7 }
  0x22   : > { %s936_s8 = scalar_lea.hbm %s935_s7, 32  ;;  %p938_p10 = pneg %p1154_p9 }
  0x23   : > { %p937_p2 = scmp.ne.s32.totalorder %s935_s7, %s936_s8  ;;  %p942_p0 = scmp.lt.s32.totalorder %s935_s7, %s1515_s3 }
  0x24   : > { %p943_p5 = scmp.lt.s32.totalorder %s941_s17, %s936_s8 }
  0x25   : > { %p939_p12 = pnand %p938_p10, %p937_p2 }
  0x26   : > { %p944_p7 = por %p943_p5, %p942_p0 }
  0x27   : > { %p940_p13 = pneg %p939_p12 }
  0x29   : > { %p945_p11 = pnand %p944_p7, %p940_p13 }
  0x2b   : > { %948 = shalt.err (!%p945_p11)
}
  0x2c   : > { %833 = dma.hbm_to_vmem [thread:$0]  (!%p1154_p9), %s151_s22, 512, %s153_s29, %s140_s5, %s1041_s10, %s1041_s10, %s1042_s11  }
  0x2d   : > { %164 = sbr.rel (%p1118_p8) target bundleno = 287 (0x11f), region = 28 }
  0x32   : > { %1011 = dma.done.wait (%p76_p1), [#allocation8], 192  }
  0x33   : > { %1013 = vsyncadd (%p76_p1), [#allocation8], 4294967104  ;;  %s1178_s16 = sand.u32 1, %s1028_s0  }
  0x34   : > { %s773_s20 = sshll.u32 %s1178_s16, 5  ;;  %s172_s21 = scalar_lea.sflag [#allocation11], %s1178_s16 }
  0x35   : > { %s175_s26 = scalar_lea.vmem [#allocation10], %s773_s20 }
  0x36   : > { %1015 = dma.done.wait (%p1105_p4), %s172_s21, 512  }
  0x37   : > { %1017 = vsyncadd (%p1105_p4), %s172_s21, 4294966784  ;;  %s1187_s6 = sshll.u32 %s1096_s25, 1  ;;  %v815_v0 = vld [vmem:[%s175_s26 + $0x8] sm:$0xff]  ;;  %v817_v1 = vld [vmem:[%s175_s26 + $0x18] sm:$0xff]  ;;  %vm204_vm0 = vcmask 257024   ;;  %vm252_vm1 = vcmask 261120   ;;  %v308_v10 = vlaneseq }
  0x38   : > { %s200_s10 = sld [smem:[#allocation5 + %s1187_s6]]  ;;  %s211_s11 = sadd.s32 1, %s1187_s6  ;;  %262 = vmatpush.bf16.msra.mxu0 %v815_v0  ;;  %296 = vmatpush.bf16.msra.mxu1 %v817_v1  ;;  %v814_v2 = vld [vmem:[%s175_s26] sm:$0xff]  ;;  %v816_v3 = vld [vmem:[%s175_s26 + $0x10] sm:$0xff]  ;;  %v1537_v25 = vmov 0  ;;  %vm1523_vm9 = vcmask 1046528  }
  0x39   : > { %s206_s22 = sld [smem:[#allocation6 + %s1187_s6]]  ;;  %v309_v11 = vshrl.u32 %v308_v10, 7  ;;  %vm1518_vm10 = vcmask 1040384   ;;  %vm1522_vm12 = vcmask 1045504   ;;  %vm1521_vm13 = vcmask 1041408   ;;  %s774_s18 = sshll.u32 %s1178_s16, 1 }
  0x3a   : > { %s212_s29 = sld [smem:[#allocation5 + %s211_s11]]  ;;  %vm1043_vm14 = vmmov 1   ;;  %s196_s19 = scalar_lea.vmem [#allocation12], %s774_s18 }
  0x3b   : > { %s218_s30 = sld [smem:[#allocation6 + %s211_s11]]  ;;  %v310_v12 = vadd.s32 8, %v309_v11  ;;  %v311_v13 = vand.u32 7, %v309_v11  ;;  %s668_s26 = scalar_lea.hbm %s1516_s4, %s1187_s6 }
  0x3c   : > { %263 = vmatpush.bf16.msra.mxu0 %v814_v2  ;;  %297 = vmatpush.bf16.msra.mxu1 %v816_v3  ;;  %v1549_v3 = vmov 0  ;;  %s672_s11 = sshll.u32 %s668_s26, 4  ;;  %s984_s6 = scalar_lea.hbm %s1516_s4, 4  ;;  %s673_s11 = int_to_ptr.hbm [resolvable:$true] %s672_s11 }
  0x3d   : > { %v312_v14 = vand.u32 7, %v310_v12  ;;  %v313_v16 = vand.u32 1, %v311_v13  ;;  %v317_v17 = vand.u32 2, %v311_v13  ;;  %v325_v21 = vand.u32 4, %v311_v13 }
  0x3e   : > { %s776_s5 = sshll.u32 %s200_s10, 2  ;;  %s670_s10 = sshll.u32 %s196_s19, 4  ;;  %s671_s10 = int_to_ptr.vmem [resolvable:$true] %s670_s10 }
  0x3f   : > { %s777_s7 = sshll.u32 %s206_s22, 2  ;;  %s202_s27 = scalar_lea.vmem [#allocation7], %s776_s5  ;;  %v314_v19 = vand.u32 1, %v312_v14  ;;  %v318_v20 = vand.u32 2, %v312_v14  ;;  %v326_v22 = vand.u32 4, %v312_v14  ;;  %vm1198_vm2 = vcmp.eq.s32.totalorder %v313_v16, 0 }
  0x40   : > { %v203_v4 = vld [vmem:[%s202_s27] sm:$0xf]  ;;  %s778_s25 = sshll.u32 %s212_s29, 2  ;;  %s208_s8 = scalar_lea.vmem [#allocation7], %s777_s7  ;;  %vm1202_vm3 = vcmp.eq.s32.totalorder %v317_v17, 0  ;;  %vm1218_vm7 = vcmp.eq.s32.totalorder %v325_v21, 0 }
  0x41   : > { %205 = vst.msk [vmem:[#allocation2] sm:$0xf] %vm204_vm0, %v203_v4  ;;  %v209_v5 = vld [vmem:[%s208_s8] sm:$0xf]  ;;  %s779_s12 = sshll.u32 %s218_s30, 2  ;;  %s214_s13 = scalar_lea.vmem [#allocation7], %s778_s25  ;;  %vm321_vm6 = vmxor %vm1198_vm2, %vm1202_vm3 }
  0x42   : > { %210 = vst.msk [vmem:[#allocation2 + $0x4] sm:$0xf] %vm204_vm0, %v209_v5  ;;  %v215_v6 = vld [vmem:[%s214_s13] sm:$0xf]  ;;  %s220_s17 = scalar_lea.vmem [#allocation7], %s779_s12  ;;  %vm1206_vm4 = vcmp.eq.s32.totalorder %v314_v19, 0  ;;  %vm1238_vm15 = vmxor %vm321_vm6, %vm1043_vm14 }
  0x43   : > { %217 = vst.msk [vmem:[#allocation2 + $0x8] sm:$0xf] %vm204_vm0, %v215_v6  ;;  %v221_v7 = vld [vmem:[%s220_s17] sm:$0xf]  ;;  %v1538_v25 = vsel %vm1206_vm4, 4294967295, %v1537_v25  ;;  %vm1210_vm5 = vcmp.eq.s32.totalorder %v318_v20, 0 }
  0x44   : > { %222 = vst.msk [vmem:[#allocation2 + $0xc] sm:$0xf] %vm204_vm0, %v221_v7  ;;  %vm1222_vm8 = vcmp.eq.s32.totalorder %v326_v22, 0  ;;  %vm322_vm11 = vmxor %vm1206_vm4, %vm1210_vm5  ;;  %s658_s22 = scalar_lea.sflag [#allocation9], %s1178_s16  ;;  %s978_s29 = sshra.s32 %s673_s11, 4  ;;  %s979_s29 = int_to_ptr.hbm [resolvable:$true] %s978_s29 }
  0x45   : > { %vm1247_vm0 = vmxor %vm322_vm11, %vm1043_vm14  ;;  %s980_s30 = scalar_lea.hbm %s979_s29, 2  ;;  %p985_p11 = scmp.lt.s32.totalorder %s979_s29, %s1516_s4 }
  0x46   : > { %vm330_vm6 = vmxor %vm1210_vm5, %vm1222_vm8  ;;  %p981_p1 = scmp.ne.s32.totalorder %s979_s29, %s980_s30  ;;  %p986_p9 = scmp.lt.s32.totalorder %s984_s6, %s980_s30 }
  0x48   : > { %p982_p4 = pnand %p981_p1, %p1144_p3  ;;  %p987_p2 = por %p986_p9, %p985_p11 }
  0x49   : > { %v812_v8 = vld [vmem:[#allocation2] sm:$0xff] }
  0x4a   : > { %792 = vmatmul.msk.bf16.vlgmr.msra.gmra.mxu0 %vm252_vm1, %v812_v8  ;;  %v1551_v8 = vmov 0  ;;  %p983_p8 = pneg %p982_p4 }
  0x4b   : > { %v813_v9 = vld [vmem:[#allocation2 + $0x8] sm:$0xff] }
  0x4c   : > { %805 = vmatmul.msk.bf16.vlgmr.msra.gmra.mxu1 %vm252_vm1, %v813_v9  ;;  %vm329_vm1 = vmxor %vm1202_vm3, %vm1218_vm7  ;;  %p988_p10 = pnand %p987_p2, %p983_p8 }
  0x4d   : > { %vm1278_vm11 = vmxor %vm329_vm1, %vm1043_vm14 }
  0x4e   : > { %v1550_v3 = vsel %vm1278_vm11, 4294967295, %v1549_v3  ;;  %vm333_vm1 = vmxor %vm1198_vm2, %vm1218_vm7 }
  0xc7   : > { %v265_v15 = vpop.f32.mrf.mxu0 }
  0xc8   : > { %v358_v30 = vrot.slane %v265_v15, 1  ;;  %v368_v31 = vrot.slane %v265_v15, 7 }
  0xc9   : > { %v1196_v18 = vpop.f32.mrf.mxu1 }
  0xca   : > { %v512_v34 = vrot.slane %v1196_v18, 1  ;;  %v521_v35 = vrot.slane %v1196_v18, 7 }
  0xcf   : > { %v267_v27 = vpop.f32.mrf.mxu0 }
  0xd0   : > { %v359_v32 = vrot.slane %v267_v27, 1  ;;  %v365_v33 = vrot.slane %v267_v27, 7 }
  0xd1   : > { %v301_v36 = vpop.f32.mrf.mxu1 }
  0xd2   : > { %v360_v38 = vsel %vm1523_vm9, %v358_v30, %v359_v32  ;;  %v364_v39 = vsel %vm1523_vm9, %v359_v32, %v358_v30  ;;  %v369_v40 = vsel %vm1518_vm10, %v368_v31, %v365_v33  ;;  %v372_v41 = vsel %vm1518_vm10, %v365_v33, %v368_v31 }
  0xd3   : > { %v373_v43 = vsel %vm1198_vm2, %v360_v38, %v372_v41  ;;  %v374_v44 = vsel %vm1206_vm4, %v364_v39, %v369_v40  ;;  %v513_v45 = vrot.slane %v301_v36, 1  ;;  %v519_v46 = vrot.slane %v301_v36, 7 }
  0xd4   : > { %v375_v47 = vmin.f32 %v265_v15, %v373_v43  ;;  %v376_v48 = vmin.f32 %v267_v27, %v374_v44  ;;  %v377_v49 = vmax.f32 %v265_v15, %v373_v43  ;;  %v378_v50 = vmax.f32 %v267_v27, %v374_v44 }
  0xd5   : > { %v514_v51 = vsel %vm1523_vm9, %v512_v34, %v513_v45  ;;  %v518_v52 = vsel %vm1523_vm9, %v513_v45, %v512_v34  ;;  %v522_v53 = vsel %vm1518_vm10, %v521_v35, %v519_v46  ;;  %v525_v54 = vsel %vm1518_vm10, %v519_v46, %v521_v35  ;;  %vm1287_vm10 = vmxor %vm330_vm6, %vm1043_vm14 }
  0xd6   : > { %v379_v55 = vsel %vm1238_vm15, %v375_v47, %v377_v49  ;;  %v380_v56 = vsel %vm1247_vm0, %v376_v48, %v378_v50  ;;  %v526_v57 = vsel %vm1198_vm2, %v514_v51, %v525_v54  ;;  %v527_v58 = vsel %vm1206_vm4, %v518_v52, %v522_v53 }
  0xd7   : > { %v384_v59 = vrot.slane %v379_v55, 2  ;;  %v385_v60 = vrot.slane %v380_v56, 2  ;;  %v391_v61 = vrot.slane %v380_v56, 6  ;;  %v394_v62 = vrot.slane %v379_v55, 6 }
  0xd8   : > { %v528_v63 = vmin.f32 %v1196_v18, %v526_v57  ;;  %v529_v0 = vmin.f32 %v301_v36, %v527_v58  ;;  %v530_v1 = vmax.f32 %v1196_v18, %v526_v57  ;;  %v531_v2 = vmax.f32 %v301_v36, %v527_v58 }
  0xd9   : > { %v386_v4 = vsel %vm1522_vm12, %v384_v59, %v385_v60  ;;  %v390_v5 = vsel %vm1522_vm12, %v385_v60, %v384_v59  ;;  %v395_v6 = vsel %vm1521_vm13, %v394_v62, %v391_v61  ;;  %v398_v7 = vsel %vm1521_vm13, %v391_v61, %v394_v62 }
  0xda   : > { %v1552_v8 = vsel %vm1287_vm10, 4294967295, %v1551_v8  ;;  %v399_v9 = vsel %vm1202_vm3, %v386_v4, %v398_v7  ;;  %v400_v10 = vsel %vm1210_vm5, %v390_v5, %v395_v6  ;;  %v532_v11 = vsel %vm1238_vm15, %v528_v63, %v530_v1  ;;  %vm334_vm15 = vmxor %vm1206_vm4, %vm1222_vm8 }
  0xdb   : > { %v533_v12 = vsel %vm1247_vm0, %v529_v0, %v531_v2  ;;  %v401_v13 = vmin.f32 %v379_v55, %v399_v9  ;;  %v402_v14 = vmin.f32 %v380_v56, %v400_v10  ;;  %v403_v15 = vmax.f32 %v379_v55, %v399_v9  ;;  %vm1316_vm0 = vmxor %vm333_vm1, %vm1043_vm14 }
  0xdc   : > { %v404_v16 = vmax.f32 %v380_v56, %v400_v10  ;;  %v536_v17 = vrot.slane %v532_v11, 2  ;;  %v537_v18 = vrot.slane %v533_v12, 2  ;;  %v543_v19 = vrot.slane %v533_v12, 6 }
  0xdd   : > { %v545_v20 = vrot.slane %v532_v11, 6  ;;  %v405_v21 = vsel %vm1278_vm11, %v401_v13, %v403_v15  ;;  %vm1555_vm6 = vcmask 1040384   ;;  %vm1325_vm11 = vmxor %vm334_vm15, %vm1043_vm14  ;;  %vm1524_vm1 = vcmask 1043456  }
  0xde   : > { %v406_v22 = vsel %vm1287_vm10, %v402_v14, %v404_v16  ;;  %v409_v27 = vrot.slane %v405_v21, 1  ;;  %v418_v32 = vrot.slane %v405_v21, 7  ;;  %v538_v33 = vsel %vm1522_vm12, %v536_v17, %v537_v18  ;;  %vm1556_vm10 = vmmov %vm1555_vm6 }
  0xdf   : > { %v410_v30 = vrot.slane %v406_v22, 1  ;;  %v416_v31 = vrot.slane %v406_v22, 7  ;;  %v542_v34 = vsel %vm1522_vm12, %v537_v18, %v536_v17  ;;  %v546_v35 = vsel %vm1521_vm13, %v545_v20, %v543_v19  ;;  %vm1347_vm15 = vmxor %vm1218_vm7, %vm1043_vm14 }
  0xe0   : > { %v549_v36 = vsel %vm1521_vm13, %v543_v19, %v545_v20  ;;  %v551_v46 = vsel %vm1210_vm5, %v542_v34, %v546_v35  ;;  %vm1562_vm13 = vnez %v1552_v8  ;;  %v1565_v9 = vmov 0 }
  0xe1   : > { %v411_v38 = vsel %vm1523_vm9, %v409_v27, %v410_v30  ;;  %v415_v39 = vsel %vm1523_vm9, %v410_v30, %v409_v27  ;;  %v419_v40 = vsel %vm1555_vm6, %v418_v32, %v416_v31  ;;  %v422_v41 = vsel %vm1556_vm10, %v416_v31, %v418_v32  ;;  %vm342_vm10 = vmxor %vm1222_vm8, %vm1043_vm14 }
  0xe2   : > { %v423_v43 = vsel %vm1198_vm2, %v411_v38, %v422_v41  ;;  %v424_v44 = vsel %vm1206_vm4, %v415_v39, %v419_v40  ;;  %v550_v45 = vsel %vm1202_vm3, %v538_v33, %v549_v36  ;;  %v553_v52 = vmin.f32 %v533_v12, %v551_v46  ;;  %vm1356_vm12 = vmxor %vm342_vm10, %vm1043_vm14 }
  0xe3   : > { %v425_v47 = vmin.f32 %v405_v21, %v423_v43  ;;  %v426_v48 = vmin.f32 %v406_v22, %v424_v44  ;;  %v427_v49 = vmax.f32 %v405_v21, %v423_v43  ;;  %v428_v50 = vmax.f32 %v406_v22, %v424_v44 }
  0xe4   : > { %v552_v51 = vmin.f32 %v532_v11, %v550_v45  ;;  %v554_v53 = vmax.f32 %v532_v11, %v550_v45  ;;  %v555_v54 = vmax.f32 %v533_v12, %v551_v46  ;;  %vm1561_vm6 = vnez %v1550_v3 }
  0xe5   : > { %v429_v55 = vsel %vm1316_vm0, %v425_v47, %v427_v49  ;;  %v430_v56 = vsel %vm1325_vm11, %v426_v48, %v428_v50  ;;  %vm1567_vm10 = vcmask 1040384  }
  0xe6   : > { %v434_v58 = vrot.slane %v429_v55, 4  ;;  %v435_v59 = vrot.slane %v430_v56, 4  ;;  %v556_v60 = vsel %vm1561_vm6, %v552_v51, %v554_v53  ;;  %v557_v61 = vsel %vm1562_vm13, %v553_v52, %v555_v54  ;;  %vm1371_vm13 = vmxor %vm1347_vm15, %vm1043_vm14 }
  0xe7   : > { %v560_v62 = vrot.slane %v556_v60, 1  ;;  %v561_v63 = vrot.slane %v557_v61, 1  ;;  %v567_v0 = vrot.slane %v557_v61, 7  ;;  %v569_v1 = vrot.slane %v556_v60, 7  ;;  %vm1568_vm6 = vmmov %vm1567_vm10 }
  0xe8   : > { %v436_v4 = vsel %vm1524_vm1, %v434_v58, %v435_v59  ;;  %v440_v5 = vsel %vm1524_vm1, %v435_v59, %v434_v58  ;;  %v1566_v9 = vsel %vm1371_vm13, 4294967295, %v1565_v9  ;;  %vm345_vm15 = vmxor %vm1202_vm3, %vm1043_vm14  ;;  %vm1571_vm1 = vcmask 1041408  }
  0xe9   : > { %v441_v3 = vsel %vm1218_vm7, %v436_v4, %v440_v5  ;;  %v442_v6 = vsel %vm1222_vm8, %v440_v5, %v436_v4  ;;  %v562_v7 = vsel %vm1523_vm9, %v560_v62, %v561_v63  ;;  %v566_v8 = vsel %vm1523_vm9, %v561_v63, %v560_v62 }
  0xea   : > { %v443_v10 = vmin.f32 %v429_v55, %v441_v3  ;;  %v444_v11 = vmin.f32 %v430_v56, %v442_v6  ;;  %v445_v12 = vmax.f32 %v429_v55, %v441_v3  ;;  %v446_v13 = vmax.f32 %v430_v56, %v442_v6 }
  0xeb   : > { %v570_v14 = vsel %vm1567_vm10, %v569_v1, %v567_v0  ;;  %v573_v15 = vsel %vm1568_vm6, %v567_v0, %v569_v1  ;;  %vm346_vm10 = vmxor %vm1210_vm5, %vm1043_vm14  ;;  %vm1569_vm6 = vcmask 1045504  }
  0xec   : > { %v448_v16 = vsel %vm1356_vm12, %v444_v11, %v446_v13  ;;  %v574_v17 = vsel %vm1198_vm2, %v562_v7, %v573_v15  ;;  %v575_v18 = vsel %vm1206_vm4, %v566_v8, %v570_v14  ;;  %v447_v19 = vsel %vm1371_vm13, %v443_v10, %v445_v12  ;;  %vm1570_vm9 = vmmov %vm1569_vm6 }
  0xed   : > { %v452_v20 = vrot.slane %v448_v16, 2  ;;  %v458_v21 = vrot.slane %v448_v16, 6  ;;  %v576_v22 = vmin.f32 %v556_v60, %v574_v17  ;;  %v577_v27 = vmin.f32 %v557_v61, %v575_v18  ;;  %vm1572_vm13 = vmmov %vm1571_vm1 }
  0xee   : > { %v578_v30 = vmax.f32 %v556_v60, %v574_v17  ;;  %v579_v31 = vmax.f32 %v557_v61, %v575_v18  ;;  %v451_v32 = vrot.slane %v447_v19, 2  ;;  %v460_v33 = vrot.slane %v447_v19, 6  ;;  %vm1400_vm4 = vmxor %vm345_vm15, %vm1043_vm14 }
  0xef   : > { %vm1581_vm15 = vcmask 1046528  }
  0xf0   : > { %v580_v34 = vsel %vm1316_vm0, %v576_v22, %v578_v30  ;;  %v581_v35 = vsel %vm1325_vm11, %v577_v27, %v579_v31  ;;  %v453_v36 = vsel %vm1569_vm6, %v451_v32, %v452_v20  ;;  %v457_v38 = vsel %vm1570_vm9, %v452_v20, %v451_v32  ;;  %vm1411_vm0 = vmxor %vm346_vm10, %vm1043_vm14 }
  0xf1   : > { %v584_v39 = vrot.slane %v580_v34, 4  ;;  %v585_v40 = vrot.slane %v581_v35, 4  ;;  %v461_v41 = vsel %vm1571_vm1, %v460_v33, %v458_v21  ;;  %v464_v43 = vsel %vm1572_vm13, %v458_v21, %v460_v33 }
  0xf2   : > { %v465_v42 = vsel %vm1202_vm3, %v453_v36, %v464_v43  ;;  %v466_v44 = vsel %vm1210_vm5, %v457_v38, %v461_v41  ;;  %vm1575_vm11 = vcmask 1043456   ;;  %vm1580_vm13 = vnez %v1566_v9 }
  0xf3   : > { %v586_v45 = vsel %vm1575_vm11, %v584_v39, %v585_v40  ;;  %vm1576_vm9 = vmmov %vm1575_vm11  ;;  %v467_v48 = vmin.f32 %v447_v19, %v465_v42  ;;  %v468_v49 = vmin.f32 %v448_v16, %v466_v44  ;;  %v469_v52 = vmax.f32 %v447_v19, %v465_v42 }
  0xf4   : > { %v590_v46 = vsel %vm1576_vm9, %v585_v40, %v584_v39  ;;  %v470_v53 = vmax.f32 %v448_v16, %v466_v44  ;;  %vm1585_vm6 = vcmask 1040384  }
  0xf5   : > { %v591_v50 = vsel %vm1218_vm7, %v586_v45, %v590_v46  ;;  %v592_v51 = vsel %vm1222_vm8, %v590_v46, %v586_v45  ;;  %v471_v58 = vsel %vm1400_vm4, %v467_v48, %v469_v52  ;;  %vm349_vm7 = vmxor %vm1198_vm2, %vm1043_vm14  ;;  %vm1579_vm8 = vnez %v1538_v25 }
  0xf6   : > { %v593_v54 = vmin.f32 %v580_v34, %v591_v50  ;;  %v594_v55 = vmin.f32 %v581_v35, %v592_v51  ;;  %v595_v56 = vmax.f32 %v580_v34, %v591_v50  ;;  %v596_v57 = vmax.f32 %v581_v35, %v592_v51  ;;  %vm350_vm1 = vmxor %vm1579_vm8, %vm1043_vm14 }
  0xf7   : > { %v472_v59 = vsel %vm1411_vm0, %v468_v49, %v470_v53  ;;  %v475_v28 = vrot.slane %v471_v58, 1  ;;  %v484_v0 = vrot.slane %v471_v58, 7  ;;  %vm1436_vm10 = vmxor %vm349_vm7, %vm1043_vm14 }
  0xf8   : > { %v598_v60 = vsel %vm1356_vm12, %v594_v55, %v596_v57  ;;  %v476_v29 = vrot.slane %v472_v59, 1  ;;  %v482_v61 = vrot.slane %v472_v59, 7  ;;  %v597_v1 = vsel %vm1580_vm13, %v593_v54, %v595_v56  ;;  %vm1582_vm12 = vmmov %vm1581_vm15 }
  0xf9   : > { %v602_v62 = vrot.slane %v598_v60, 2  ;;  %v608_v63 = vrot.slane %v598_v60, 6  ;;  %v601_v5 = vrot.slane %v597_v1, 2  ;;  %v610_v3 = vrot.slane %v597_v1, 6  ;;  %vm1586_vm11 = vmmov %vm1585_vm6 }
  0xfa   : > { %v477_v2 = vsel %vm1581_vm15, %v475_v28, %v476_v29  ;;  %v481_v4 = vsel %vm1582_vm12, %v476_v29, %v475_v28  ;;  %v485_v7 = vsel %vm1585_vm6, %v484_v0, %v482_v61  ;;  %v488_v8 = vsel %vm1586_vm11, %v482_v61, %v484_v0  ;;  %vm1443_vm9 = vmxor %vm350_vm1, %vm1043_vm14 }
  0xfb   : > { %v489_v9 = vsel %vm1198_vm2, %v477_v2, %v488_v8  ;;  %v490_v11 = vsel %vm1579_vm8, %v481_v4, %v485_v7  ;;  %vm1589_vm13 = vcmask 1045504   ;;  %vm1591_vm15 = vcmask 1041408   ;;  %vm1595_vm1 = vmmov %vm1585_vm6 }
  0xfc   : > { %v603_v12 = vsel %vm1589_vm13, %v601_v5, %v602_v62  ;;  %vm1590_vm7 = vmmov %vm1589_vm13  ;;  %v491_v14 = vmin.f32 %v471_v58, %v489_v9  ;;  %v492_v15 = vmin.f32 %v472_v59, %v490_v11  ;;  %v493_v16 = vmax.f32 %v471_v58, %v489_v9 }
  0xfd   : > { %v607_v13 = vsel %vm1590_vm7, %v602_v62, %v601_v5  ;;  %v494_v17 = vmax.f32 %v472_v59, %v490_v11  ;;  %v611_v18 = vsel %vm1591_vm15, %v610_v3, %v608_v63  ;;  %vm1592_vm14 = vmmov %vm1591_vm15 }
  0xfe   : > { %v614_v19 = vsel %vm1592_vm14, %v608_v63, %v610_v3  ;;  %v495_v20 = vsel %vm1436_vm10, %v491_v14, %v493_v16  ;;  %v616_v27 = vsel %vm1210_vm5, %v607_v13, %v611_v18 }
  0xff   : > { %v496_v21 = vsel %vm1443_vm9, %v492_v15, %v494_v17  ;;  %v615_v22 = vsel %vm1202_vm3, %v603_v12, %v614_v19  ;;  %v618_v32 = vmin.f32 %v598_v60, %v616_v27  ;;  %v620_v34 = vmax.f32 %v598_v60, %v616_v27  ;;  %vm1593_vm3 = vmmov %vm1582_vm12 }
 0x100   : > { %v497_v30 = vsub.f32 %v495_v20, %v496_v21  ;;  %v617_v31 = vmin.f32 %v597_v1, %v615_v22  ;;  %v619_v33 = vmax.f32 %v597_v1, %v615_v22  ;;  %vm1594_vm5 = vmmov %vm1593_vm3 }
 0x101   : > { %v622_v38 = vsel %vm1411_vm0, %v618_v32, %v620_v34  ;;  %vm1596_vm12 = vmmov %vm1595_vm1 }
 0x102   : > { %v498_v35 = vmul.f32 %v497_v30, %v497_v30  ;;  %v621_v36 = vsel %vm1400_vm4, %v617_v31, %v619_v33  ;;  %v626_v24 = vrot.slane %v622_v38, 1  ;;  %v632_v43 = vrot.slane %v622_v38, 7 }
 0x103   : > { %v625_v39 = vrot.slane %v621_v36, 1  ;;  %v634_v40 = vrot.slane %v621_v36, 7 }
 0x104   : > { %v499_v41 = vrot.slane %v498_v35, 4 }
 0x105   : > { %v627_v42 = vsel %vm1593_vm3, %v625_v39, %v626_v24  ;;  %v631_v44 = vsel %vm1594_vm5, %v626_v24, %v625_v39  ;;  %v635_v45 = vsel %vm1595_vm1, %v634_v40, %v632_v43  ;;  %v638_v46 = vsel %vm1596_vm12, %v632_v43, %v634_v40 }
 0x106   : > { %v500_v26 = vadd.f32 %v499_v41, %v498_v35  ;;  %v640_v37 = vsel %vm1579_vm8, %v631_v44, %v635_v45  ;;  %v639_v48 = vsel %vm1198_vm2, %v627_v42, %v638_v46 }
 0x107   : > { %v642_v49 = vmin.f32 %v622_v38, %v640_v37  ;;  %v644_v50 = vmax.f32 %v622_v38, %v640_v37  ;;  %v641_v51 = vmin.f32 %v621_v36, %v639_v48  ;;  %v643_v52 = vmax.f32 %v621_v36, %v639_v48 }
 0x108   : > { %v501_v47 = vrot.slane %v500_v26, 2 }
 0x109   : > { %v646_v54 = vsel %vm1443_vm9, %v642_v49, %v644_v50  ;;  %v645_v55 = vsel %vm1436_vm10, %v641_v51, %v643_v52 }
 0x10a   : > { %v502_v53 = vadd.f32 %v501_v47, %v500_v26  ;;  %v647_v25 = vsub.f32 %v645_v55, %v646_v54 }
 0x10c   : > { %v503_v56 = vrot.slane %v502_v53, 1  ;;  %v648_v58 = vmul.f32 %v647_v25, %v647_v25 }
 0x10e   : > { %v504_v57 = vadd.f32 %v503_v56, %v502_v53  ;;  %v649_v23 = vrot.slane %v648_v58, 4 }
 0x110   : > { %v505_v59 = vmul.f32 0.125, %v504_v57  ;;  %v650_v60 = vadd.f32 %v649_v23, %v648_v58 }
 0x112   : > { %506 = vst [vmem:[%s196_s19] sm:$0x1] %v505_v59  ;;  %v651_v28 = vrot.slane %v650_v60, 2 }
 0x114   : > { %v652_v29 = vadd.f32 %v651_v28, %v650_v60 }
 0x116   : > { %v653_v61 = vrot.slane %v652_v29, 1 }
 0x118   : > { %v654_v62 = vadd.f32 %v653_v61, %v652_v29 }
 0x11a   : > { %v655_v63 = vmul.f32 0.125, %v654_v62 }
 0x11c   : > { %656 = vst [vmem:[%s196_s19 + $0x1] sm:$0x1] %v655_v63 }
 0x11d   : > { %991 = shalt.err (!%p988_p10)
}
 0x11e   : > { %824 = dma.vmem_to_hbm [thread:$0]  (%p1144_p3), %s671_s10, 32, %s673_s11, %s658_s22  }
 0x11f PF: > { %s684_s16 = sand.u32 1, %s1024_s23   ;;  %p1597_p12 = scmp.ge.s32.totalorder %s1036_s1, 2 }
 0x120   : > { %s685_s8 = scalar_lea.sflag [#allocation9], %s684_s16 }
 0x121   : > { %p835_p13 = pnand %p1597_p12, %p1110_p6 }
 0x123   : > { %p836_p0 = pneg %p835_p13 }
 0x125   : > { %1019 = dma.done.wait (%p836_p0), %s685_s8, 32  }
 0x126   : > { %1021 = vsyncadd (%p836_p0), %s685_s8, 4294967264  ;;  %p31_p5 = scmp.ge.s32.totalorder %s1128_s9, 4   ;;  %s1598_s23 = smov %s1028_s0 }
 0x127   : > { %s1599_s0 = smov %s1032_s24  ;;  %s1600_s24 = smov %s1140_s14 }
 0x128   : > { %s1601_s1 = smov %s1128_s9  ;;  %33 = sbr.rel (!%p31_p5) target bundleno = 13 (0xd), region = 84 }
 0x12d   :  { %691 = vsyncpa [#allocation8], 1 }
 0x12e   :  { %693 = vsyncpa [#allocation8 + $0x1], 1 }
 0x12f   :  { %694 = vsyncpa [#allocation11], 1 }
 0x130   :  { %696 = vsyncpa [#allocation11 + $0x1], 1 }
 0x131   :  { %697 = vsyncpa [#allocation9], 1 }
 0x132   :  { %699 = vsyncpa [#allocation9 + $0x1], 1 }

</bundles_post_ra>
